<compile_context>
chip_gen: v7x
topology: tpu7x:2x2x1
jax: 0.10.0
libtpu: 0.0.40
codegen_flags: <defaults>
</compile_context>

<pallas_src>
import math
import functools

import jax
import jax.numpy as jnp
import numpy as np
from jax.experimental import pallas as pl
from jax.experimental.pallas import tpu as pltpu


def _attn_kernel(x_ref, wq_ref, wk_ref, wv_ref, bq_ref, bk_ref, bv_ref,
                 wp_ref, bp_ref, o_ref, *, n_head: int):
    # One batch element per grid step: x_ref is (1, T, C), bf16.
    x = x_ref[0]                                            # (T, C) bf16
    T, C = x.shape
    hd = C // n_head
    scale = jnp.float32(1.0 / math.sqrt(hd))

    # QKV projections: bf16 MXU inputs, f32 accumulation, f32 bias add.
    q = jnp.dot(x, wq_ref[...], preferred_element_type=jnp.float32) + bq_ref[...]
    k = jnp.dot(x, wk_ref[...], preferred_element_type=jnp.float32) + bk_ref[...]
    v = jnp.dot(x, wv_ref[...], preferred_element_type=jnp.float32) + bv_ref[...]

    # Hoisted bf16 copies for the score / AV matmuls (cast once, not per head).
    q_bf = q.astype(jnp.bfloat16)
    k_bf = k.astype(jnp.bfloat16)
    v_bf = v.astype(jnp.bfloat16)

    # Causal mask (T, T): col <= row.  Mask constant stays f32.
    row = jax.lax.broadcasted_iota(jnp.int32, (T, T), 0)
    col = jax.lax.broadcasted_iota(jnp.int32, (T, T), 1)
    causal = col <= row
    neg = jnp.float32(-1e30)

    acc = jnp.zeros((T, C), jnp.float32)
    for h in range(n_head):
        qh = q_bf[:, h * hd:(h + 1) * hd]                   # (T, hd) bf16
        kh = k_bf[:, h * hd:(h + 1) * hd]                   # (T, hd) bf16
        vh = v_bf[:, h * hd:(h + 1) * hd]                   # (T, hd) bf16

        # Scores: contract last dims directly (no explicit kh.T materialization).
        s = jax.lax.dot_general(qh, kh, (((1,), (1,)), ((), ())),
                                preferred_element_type=jnp.float32) * scale
        s = jnp.where(causal, s, neg)                       # f32

        # Explicit softmax: max-subtract, exp (EUP), approx reciprocal (EUP).
        m = jnp.max(s, axis=-1, keepdims=True)
        e = jnp.exp(s - m)
        l = jnp.sum(e, axis=-1, keepdims=True)
        p = e * pl.reciprocal(l, approx=True)               # (T, T) f32
        # TODO(synk): attn_dropout / resid_dropout skipped (inference, dropout_p=0).

        # Fold the head concat into the output projection:
        #   acc += (p @ v_h) @ w_projT[h]
        pv = jnp.dot(p.astype(jnp.bfloat16), vh,
                     preferred_element_type=jnp.float32)     # (T, hd) f32
        acc = acc + jnp.dot(pv.astype(jnp.bfloat16), wp_ref[h],
                            preferred_element_type=jnp.float32)  # (T, C) f32

    o_ref[0] = (acc + bp_ref[...]).astype(o_ref.dtype)


def causal_self_attention(x, w_attn, b_attn, w_proj, b_proj, *, n_head):
    """x: (B, T, C); w_attn: (3C, C); b_attn: (1, 3C); w_proj: (C, C); b_proj: (1, C)."""
    B, T, C = x.shape
    hd = C // n_head

    # ---- wrapper-side weight prep (one-time, outside the kernel) ----
    w_attn_t = jnp.transpose(w_attn)                         # (C, 3C): y = x @ W.T
    wq = w_attn_t[:, 0 * C:1 * C].astype(jnp.bfloat16)       # (C, C)
    wk = w_attn_t[:, 1 * C:2 * C].astype(jnp.bfloat16)       # (C, C)
    wv = w_attn_t[:, 2 * C:3 * C].astype(jnp.bfloat16)       # (C, C)
    bq = b_attn[:, 0 * C:1 * C].astype(jnp.float32)          # (1, C)
    bk = b_attn[:, 1 * C:2 * C].astype(jnp.float32)          # (1, C)
    bv = b_attn[:, 2 * C:3 * C].astype(jnp.float32)          # (1, C)
    # Per-head slabs of w_proj.T so the kernel indexes the leading axis only.
    wp = jnp.transpose(w_proj).reshape(n_head, hd, C).astype(jnp.bfloat16)
    bp = b_proj.astype(jnp.float32)                          # (1, C)
    x_bf = x.astype(jnp.bfloat16)

    kernel = functools.partial(_attn_kernel, n_head=n_head)
    return pl.pallas_call(
        kernel,
        out_shape=jax.ShapeDtypeStruct((B, T, C), x.dtype),
        grid=(B,),
        in_specs=[
            pl.BlockSpec((1, T, C), lambda b: (b, 0, 0)),        # x, per batch
            pl.BlockSpec((C, C), lambda b: (0, 0)),              # w_q.T
            pl.BlockSpec((C, C), lambda b: (0, 0)),              # w_k.T
            pl.BlockSpec((C, C), lambda b: (0, 0)),              # w_v.T
            pl.BlockSpec((1, C), lambda b: (0, 0)),              # b_q
            pl.BlockSpec((1, C), lambda b: (0, 0)),              # b_k
            pl.BlockSpec((1, C), lambda b: (0, 0)),              # b_v
            pl.BlockSpec((n_head, hd, C), lambda b: (0, 0, 0)),  # w_proj.T per head
            pl.BlockSpec((1, C), lambda b: (0, 0)),              # b_proj
        ],
        out_specs=pl.BlockSpec((1, T, C), lambda b: (b, 0, 0)),
        compiler_params=pltpu.CompilerParams(
            dimension_semantics=("parallel",)),                  # one batch per TC on v7x
    )(x_bf, wq, wk, wv, bq, bk, bv, wp, bp)


def _reference(x, w_attn, b_attn, w_proj, b_proj, n_head):
    B, T, C = x.shape
    hd = C // n_head
    qkv = jnp.einsum('btc,oc->bto', x, w_attn) + b_attn[0]
    q, k, v = jnp.split(qkv, 3, axis=-1)
    def heads(t):  # (B, T, C) -> (B, nh, T, hd)
        return t.reshape(B, T, n_head, hd).transpose(0, 2, 1, 3)
    q, k, v = heads(q), heads(k), heads(v)
    att = jnp.einsum('bhqd,bhkd->bhqk', q, k) / math.sqrt(hd)
    mask = jnp.tril(jnp.ones((T, T), dtype=bool))
    att = jnp.where(mask[None, None], att, -1e30)
    att = jax.nn.softmax(att, axis=-1)
    y = jnp.einsum('bhqk,bhkd->bhqd', att, v)
    y = y.transpose(0, 2, 1, 3).reshape(B, T, C)
    return jnp.einsum('btc,oc->bto', y, w_proj) + b_proj[0]


if __name__ == "__main__":
    # Module hyper-parameters (small, consistent with the forward):
    emb_dim = 32          # embedding_dimension
    n_head = 4
    num_species = 4       # N
    num_reactions = 7     # M
    block_size = num_species * 2 + num_reactions + 1   # T = 16
    batch = 2
    # bias=True, dropout_rate=0.0 (inference)

    key = jax.random.PRNGKey(0)
    k1, k2, k3, k4, k5 = jax.random.split(key, 5)
    x = jax.random.normal(k1, (batch, block_size, emb_dim), dtype=jnp.float32)
    w_attn = 0.02 * jax.random.normal(k2, (3 * emb_dim, emb_dim), dtype=jnp.float32)
    b_attn = 0.02 * jax.random.normal(k3, (1, 3 * emb_dim), dtype=jnp.float32)
    w_proj = 0.02 * jax.random.normal(k4, (emb_dim, emb_dim), dtype=jnp.float32)
    b_proj = 0.02 * jax.random.normal(k5, (1, emb_dim), dtype=jnp.float32)

    out = causal_self_attention(x, w_attn, b_attn, w_proj, b_proj, n_head=n_head)
    out = jax.block_until_ready(out)

    ref = _reference(x, w_attn, b_attn, w_proj, b_proj, n_head)
    # bf16 MXU inputs with f32 accumulation -> tolerance widened vs pure-f32 ref.
    np.testing.assert_allclose(np.asarray(out), np.asarray(ref), rtol=2e-3, atol=2e-3)
    print("KERNEL_OK")
</pallas_src>

<mosaic_0001>
module attributes {stable_mosaic.version = 11 : i64} {
  func.func @_attn_kernel(%arg0: i32, %arg1: memref<1x16x32xbf16, #tpu.memory_space<vmem>>, %arg2: memref<32x32xbf16, #tpu.memory_space<vmem>>, %arg3: memref<32x32xbf16, #tpu.memory_space<vmem>>, %arg4: memref<32x32xbf16, #tpu.memory_space<vmem>>, %arg5: memref<1x32xf32, #tpu.memory_space<vmem>>, %arg6: memref<1x32xf32, #tpu.memory_space<vmem>>, %arg7: memref<1x32xf32, #tpu.memory_space<vmem>>, %arg8: memref<4x8x32xbf16, #tpu.memory_space<vmem>>, %arg9: memref<1x32xf32, #tpu.memory_space<vmem>>, %arg10: memref<1x16x32xf32, #tpu.memory_space<vmem>>) attributes {dimension_semantics = [#tpu.dimension_semantics<parallel>], iteration_bounds = array<i64: 2>, scalar_prefetch = 0 : i64, scratch_operands = 0 : i64, tpu.core_type = #tpu.core_type<tc>, window_params = [{transform_indices = @transform_0, window_bounds = array<i64: 1, 16, 32>}, {pipeline_mode = #tpu.pipeline_mode<synchronous>, transform_indices = @transform_1, window_bounds = array<i64: 32, 32>}, {pipeline_mode = #tpu.pipeline_mode<synchronous>, transform_indices = @transform_2, window_bounds = array<i64: 32, 32>}, {pipeline_mode = #tpu.pipeline_mode<synchronous>, transform_indices = @transform_3, window_bounds = array<i64: 32, 32>}, {pipeline_mode = #tpu.pipeline_mode<synchronous>, transform_indices = @transform_4, window_bounds = array<i64: 1, 32>}, {pipeline_mode = #tpu.pipeline_mode<synchronous>, transform_indices = @transform_5, window_bounds = array<i64: 1, 32>}, {pipeline_mode = #tpu.pipeline_mode<synchronous>, transform_indices = @transform_6, window_bounds = array<i64: 1, 32>}, {pipeline_mode = #tpu.pipeline_mode<synchronous>, transform_indices = @transform_7, window_bounds = array<i64: 4, 8, 32>}, {pipeline_mode = #tpu.pipeline_mode<synchronous>, transform_indices = @transform_8, window_bounds = array<i64: 1, 32>}, {transform_indices = @transform_9, window_bounds = array<i64: 1, 16, 32>}]} {
    %c0 = arith.constant 0 : index
    %c0_0 = arith.constant 0 : index
    %c0_1 = arith.constant 0 : index
    %0 = vector.load %arg1[%c0, %c0_0, %c0_1] : memref<1x16x32xbf16, #tpu.memory_space<vmem>>, vector<1x16x32xbf16>
    %1 = vector.shape_cast %0 : vector<1x16x32xbf16> to vector<16x32xbf16>
    %c0_2 = arith.constant 0 : index
    %c0_3 = arith.constant 0 : index
    %2 = vector.load %arg2[%c0_2, %c0_3] : memref<32x32xbf16, #tpu.memory_space<vmem>>, vector<32x32xbf16>
    %cst = arith.constant dense<0.000000e+00> : vector<16x32xf32>
    %3 = tpu.matmul %1, %2, %cst {dimension_numbers = #tpu.dot_dimension_numbers<[1], [0], [0], [1], [0, 0, 1, 1], [], []>} : vector<16x32xbf16>, vector<32x32xbf16>, vector<16x32xf32> -> vector<16x32xf32>
    %c0_4 = arith.constant 0 : index
    %c0_5 = arith.constant 0 : index
    %4 = vector.load %arg5[%c0_4, %c0_5] : memref<1x32xf32, #tpu.memory_space<vmem>>, vector<1x32xf32>
    %5 = vector.broadcast %4 : vector<1x32xf32> to vector<16x32xf32>
    %6 = arith.addf %3, %5 : vector<16x32xf32>
    %c0_6 = arith.constant 0 : index
    %c0_7 = arith.constant 0 : index
    %7 = vector.load %arg3[%c0_6, %c0_7] : memref<32x32xbf16, #tpu.memory_space<vmem>>, vector<32x32xbf16>
    %cst_8 = arith.constant dense<0.000000e+00> : vector<16x32xf32>
    %8 = tpu.matmul %1, %7, %cst_8 {dimension_numbers = #tpu.dot_dimension_numbers<[1], [0], [0], [1], [0, 0, 1, 1], [], []>} : vector<16x32xbf16>, vector<32x32xbf16>, vector<16x32xf32> -> vector<16x32xf32>
    %c0_9 = arith.constant 0 : index
    %c0_10 = arith.constant 0 : index
    %9 = vector.load %arg6[%c0_9, %c0_10] : memref<1x32xf32, #tpu.memory_space<vmem>>, vector<1x32xf32>
    %10 = vector.broadcast %9 : vector<1x32xf32> to vector<16x32xf32>
    %11 = arith.addf %8, %10 : vector<16x32xf32>
    %c0_11 = arith.constant 0 : index
    %c0_12 = arith.constant 0 : index
    %12 = vector.load %arg4[%c0_11, %c0_12] : memref<32x32xbf16, #tpu.memory_space<vmem>>, vector<32x32xbf16>
    %cst_13 = arith.constant dense<0.000000e+00> : vector<16x32xf32>
    %13 = tpu.matmul %1, %12, %cst_13 {dimension_numbers = #tpu.dot_dimension_numbers<[1], [0], [0], [1], [0, 0, 1, 1], [], []>} : vector<16x32xbf16>, vector<32x32xbf16>, vector<16x32xf32> -> vector<16x32xf32>
    %c0_14 = arith.constant 0 : index
    %c0_15 = arith.constant 0 : index
    %14 = vector.load %arg7[%c0_14, %c0_15] : memref<1x32xf32, #tpu.memory_space<vmem>>, vector<1x32xf32>
    %15 = vector.broadcast %14 : vector<1x32xf32> to vector<16x32xf32>
    %16 = arith.addf %13, %15 : vector<16x32xf32>
    %17 = arith.truncf %6 : vector<16x32xf32> to vector<16x32xbf16>
    %18 = arith.truncf %11 : vector<16x32xf32> to vector<16x32xbf16>
    %19 = arith.truncf %16 : vector<16x32xf32> to vector<16x32xbf16>
    %20 = tpu.iota {dimensions = array<i32: 0>} : vector<16x16xi32>
    %21 = tpu.iota {dimensions = array<i32: 1>} : vector<16x16xi32>
    %22 = arith.cmpi sle, %21, %20 : vector<16x16xi32>
    %cst_16 = arith.constant 0.000000e+00 : f32
    %23 = vector.broadcast %cst_16 : f32 to vector<16x32xf32>
    %24 = vector.extract_strided_slice %17 {offsets = [0, 0], sizes = [16, 8], strides = [1, 1]} : vector<16x32xbf16> to vector<16x8xbf16>
    %25 = vector.extract_strided_slice %18 {offsets = [0, 0], sizes = [16, 8], strides = [1, 1]} : vector<16x32xbf16> to vector<16x8xbf16>
    %26 = vector.extract_strided_slice %19 {offsets = [0, 0], sizes = [16, 8], strides = [1, 1]} : vector<16x32xbf16> to vector<16x8xbf16>
    %cst_17 = arith.constant dense<0.000000e+00> : vector<16x16xf32>
    %27 = tpu.matmul %24, %25, %cst_17 {dimension_numbers = #tpu.dot_dimension_numbers<[1], [1], [0], [0], [0, 0, 1, 0], [], []>} : vector<16x8xbf16>, vector<16x8xbf16>, vector<16x16xf32> -> vector<16x16xf32>
    %cst_18 = arith.constant 0.353553385 : f32
    %28 = vector.broadcast %cst_18 : f32 to vector<16x16xf32>
    %29 = arith.mulf %27, %28 : vector<16x16xf32>
    %cst_19 = arith.constant -1.000000e+30 : f32
    %30 = vector.broadcast %cst_19 : f32 to vector<16x16xf32>
    %31 = arith.select %22, %29, %30 : vector<16x16xi1>, vector<16x16xf32>
    %cst_20 = arith.constant dense<0xFF800000> : vector<16xf32>
    %32 = vector.multi_reduction <maximumf>, %31, %cst_20 [1] : vector<16x16xf32> to vector<16xf32>
    %33 = vector.shape_cast %32 : vector<16xf32> to vector<16x1xf32>
    %34 = vector.broadcast %33 : vector<16x1xf32> to vector<16x16xf32>
    %35 = arith.subf %31, %34 : vector<16x16xf32>
    %36 = math.exp %35 : vector<16x16xf32>
    %cst_21 = arith.constant dense<0.000000e+00> : vector<16xf32>
    %37 = vector.multi_reduction <add>, %36, %cst_21 [1] : vector<16x16xf32> to vector<16xf32>
    %38 = vector.shape_cast %37 : vector<16xf32> to vector<16x1xf32>
    %39 = tpu.reciprocal %38 {approx = true} : vector<16x1xf32> -> vector<16x1xf32>
    %40 = vector.broadcast %39 : vector<16x1xf32> to vector<16x16xf32>
    %41 = arith.mulf %36, %40 : vector<16x16xf32>
    %42 = arith.truncf %41 : vector<16x16xf32> to vector<16x16xbf16>
    %cst_22 = arith.constant dense<0.000000e+00> : vector<16x8xf32>
    %43 = tpu.matmul %42, %26, %cst_22 {dimension_numbers = #tpu.dot_dimension_numbers<[1], [0], [0], [1], [0, 0, 1, 1], [], []>} : vector<16x16xbf16>, vector<16x8xbf16>, vector<16x8xf32> -> vector<16x8xf32>
    %44 = arith.truncf %43 : vector<16x8xf32> to vector<16x8xbf16>
    %c0_23 = arith.constant 0 : index
    %c0_24 = arith.constant 0 : index
    %c0_25 = arith.constant 0 : index
    %45 = vector.load %arg8[%c0_23, %c0_24, %c0_25] : memref<4x8x32xbf16, #tpu.memory_space<vmem>>, vector<1x8x32xbf16>
    %46 = vector.shape_cast %45 : vector<1x8x32xbf16> to vector<8x32xbf16>
    %cst_26 = arith.constant dense<0.000000e+00> : vector<16x32xf32>
    %47 = tpu.matmul %44, %46, %cst_26 {dimension_numbers = #tpu.dot_dimension_numbers<[1], [0], [0], [1], [0, 0, 1, 1], [], []>} : vector<16x8xbf16>, vector<8x32xbf16>, vector<16x32xf32> -> vector<16x32xf32>
    %48 = arith.addf %23, %47 : vector<16x32xf32>
    %49 = vector.extract_strided_slice %17 {offsets = [0, 8], sizes = [16, 8], strides = [1, 1]} : vector<16x32xbf16> to vector<16x8xbf16>
    %50 = vector.extract_strided_slice %18 {offsets = [0, 8], sizes = [16, 8], strides = [1, 1]} : vector<16x32xbf16> to vector<16x8xbf16>
    %51 = vector.extract_strided_slice %19 {offsets = [0, 8], sizes = [16, 8], strides = [1, 1]} : vector<16x32xbf16> to vector<16x8xbf16>
    %cst_27 = arith.constant dense<0.000000e+00> : vector<16x16xf32>
    %52 = tpu.matmul %49, %50, %cst_27 {dimension_numbers = #tpu.dot_dimension_numbers<[1], [1], [0], [0], [0, 0, 1, 0], [], []>} : vector<16x8xbf16>, vector<16x8xbf16>, vector<16x16xf32> -> vector<16x16xf32>
    %cst_28 = arith.constant 0.353553385 : f32
    %53 = vector.broadcast %cst_28 : f32 to vector<16x16xf32>
    %54 = arith.mulf %52, %53 : vector<16x16xf32>
    %cst_29 = arith.constant -1.000000e+30 : f32
    %55 = vector.broadcast %cst_29 : f32 to vector<16x16xf32>
    %56 = arith.select %22, %54, %55 : vector<16x16xi1>, vector<16x16xf32>
    %cst_30 = arith.constant dense<0xFF800000> : vector<16xf32>
    %57 = vector.multi_reduction <maximumf>, %56, %cst_30 [1] : vector<16x16xf32> to vector<16xf32>
    %58 = vector.shape_cast %57 : vector<16xf32> to vector<16x1xf32>
    %59 = vector.broadcast %58 : vector<16x1xf32> to vector<16x16xf32>
    %60 = arith.subf %56, %59 : vector<16x16xf32>
    %61 = math.exp %60 : vector<16x16xf32>
    %cst_31 = arith.constant dense<0.000000e+00> : vector<16xf32>
    %62 = vector.multi_reduction <add>, %61, %cst_31 [1] : vector<16x16xf32> to vector<16xf32>
    %63 = vector.shape_cast %62 : vector<16xf32> to vector<16x1xf32>
    %64 = tpu.reciprocal %63 {approx = true} : vector<16x1xf32> -> vector<16x1xf32>
    %65 = vector.broadcast %64 : vector<16x1xf32> to vector<16x16xf32>
    %66 = arith.mulf %61, %65 : vector<16x16xf32>
    %67 = arith.truncf %66 : vector<16x16xf32> to vector<16x16xbf16>
    %cst_32 = arith.constant dense<0.000000e+00> : vector<16x8xf32>
    %68 = tpu.matmul %67, %51, %cst_32 {dimension_numbers = #tpu.dot_dimension_numbers<[1], [0], [0], [1], [0, 0, 1, 1], [], []>} : vector<16x16xbf16>, vector<16x8xbf16>, vector<16x8xf32> -> vector<16x8xf32>
    %69 = arith.truncf %68 : vector<16x8xf32> to vector<16x8xbf16>
    %c1 = arith.constant 1 : index
    %c0_33 = arith.constant 0 : index
    %c0_34 = arith.constant 0 : index
    %70 = vector.load %arg8[%c1, %c0_33, %c0_34] : memref<4x8x32xbf16, #tpu.memory_space<vmem>>, vector<1x8x32xbf16>
    %71 = vector.shape_cast %70 : vector<1x8x32xbf16> to vector<8x32xbf16>
    %cst_35 = arith.constant dense<0.000000e+00> : vector<16x32xf32>
    %72 = tpu.matmul %69, %71, %cst_35 {dimension_numbers = #tpu.dot_dimension_numbers<[1], [0], [0], [1], [0, 0, 1, 1], [], []>} : vector<16x8xbf16>, vector<8x32xbf16>, vector<16x32xf32> -> vector<16x32xf32>
    %73 = arith.addf %48, %72 : vector<16x32xf32>
    %74 = vector.extract_strided_slice %17 {offsets = [0, 16], sizes = [16, 8], strides = [1, 1]} : vector<16x32xbf16> to vector<16x8xbf16>
    %75 = vector.extract_strided_slice %18 {offsets = [0, 16], sizes = [16, 8], strides = [1, 1]} : vector<16x32xbf16> to vector<16x8xbf16>
    %76 = vector.extract_strided_slice %19 {offsets = [0, 16], sizes = [16, 8], strides = [1, 1]} : vector<16x32xbf16> to vector<16x8xbf16>
    %cst_36 = arith.constant dense<0.000000e+00> : vector<16x16xf32>
    %77 = tpu.matmul %74, %75, %cst_36 {dimension_numbers = #tpu.dot_dimension_numbers<[1], [1], [0], [0], [0, 0, 1, 0], [], []>} : vector<16x8xbf16>, vector<16x8xbf16>, vector<16x16xf32> -> vector<16x16xf32>
    %cst_37 = arith.constant 0.353553385 : f32
    %78 = vector.broadcast %cst_37 : f32 to vector<16x16xf32>
    %79 = arith.mulf %77, %78 : vector<16x16xf32>
    %cst_38 = arith.constant -1.000000e+30 : f32
    %80 = vector.broadcast %cst_38 : f32 to vector<16x16xf32>
    %81 = arith.select %22, %79, %80 : vector<16x16xi1>, vector<16x16xf32>
    %cst_39 = arith.constant dense<0xFF800000> : vector<16xf32>
    %82 = vector.multi_reduction <maximumf>, %81, %cst_39 [1] : vector<16x16xf32> to vector<16xf32>
    %83 = vector.shape_cast %82 : vector<16xf32> to vector<16x1xf32>
    %84 = vector.broadcast %83 : vector<16x1xf32> to vector<16x16xf32>
    %85 = arith.subf %81, %84 : vector<16x16xf32>
    %86 = math.exp %85 : vector<16x16xf32>
    %cst_40 = arith.constant dense<0.000000e+00> : vector<16xf32>
    %87 = vector.multi_reduction <add>, %86, %cst_40 [1] : vector<16x16xf32> to vector<16xf32>
    %88 = vector.shape_cast %87 : vector<16xf32> to vector<16x1xf32>
    %89 = tpu.reciprocal %88 {approx = true} : vector<16x1xf32> -> vector<16x1xf32>
    %90 = vector.broadcast %89 : vector<16x1xf32> to vector<16x16xf32>
    %91 = arith.mulf %86, %90 : vector<16x16xf32>
    %92 = arith.truncf %91 : vector<16x16xf32> to vector<16x16xbf16>
    %cst_41 = arith.constant dense<0.000000e+00> : vector<16x8xf32>
    %93 = tpu.matmul %92, %76, %cst_41 {dimension_numbers = #tpu.dot_dimension_numbers<[1], [0], [0], [1], [0, 0, 1, 1], [], []>} : vector<16x16xbf16>, vector<16x8xbf16>, vector<16x8xf32> -> vector<16x8xf32>
    %94 = arith.truncf %93 : vector<16x8xf32> to vector<16x8xbf16>
    %c2 = arith.constant 2 : index
    %c0_42 = arith.constant 0 : index
    %c0_43 = arith.constant 0 : index
    %95 = vector.load %arg8[%c2, %c0_42, %c0_43] : memref<4x8x32xbf16, #tpu.memory_space<vmem>>, vector<1x8x32xbf16>
    %96 = vector.shape_cast %95 : vector<1x8x32xbf16> to vector<8x32xbf16>
    %cst_44 = arith.constant dense<0.000000e+00> : vector<16x32xf32>
    %97 = tpu.matmul %94, %96, %cst_44 {dimension_numbers = #tpu.dot_dimension_numbers<[1], [0], [0], [1], [0, 0, 1, 1], [], []>} : vector<16x8xbf16>, vector<8x32xbf16>, vector<16x32xf32> -> vector<16x32xf32>
    %98 = arith.addf %73, %97 : vector<16x32xf32>
    %99 = vector.extract_strided_slice %17 {offsets = [0, 24], sizes = [16, 8], strides = [1, 1]} : vector<16x32xbf16> to vector<16x8xbf16>
    %100 = vector.extract_strided_slice %18 {offsets = [0, 24], sizes = [16, 8], strides = [1, 1]} : vector<16x32xbf16> to vector<16x8xbf16>
    %101 = vector.extract_strided_slice %19 {offsets = [0, 24], sizes = [16, 8], strides = [1, 1]} : vector<16x32xbf16> to vector<16x8xbf16>
    %cst_45 = arith.constant dense<0.000000e+00> : vector<16x16xf32>
    %102 = tpu.matmul %99, %100, %cst_45 {dimension_numbers = #tpu.dot_dimension_numbers<[1], [1], [0], [0], [0, 0, 1, 0], [], []>} : vector<16x8xbf16>, vector<16x8xbf16>, vector<16x16xf32> -> vector<16x16xf32>
    %cst_46 = arith.constant 0.353553385 : f32
    %103 = vector.broadcast %cst_46 : f32 to vector<16x16xf32>
    %104 = arith.mulf %102, %103 : vector<16x16xf32>
    %cst_47 = arith.constant -1.000000e+30 : f32
    %105 = vector.broadcast %cst_47 : f32 to vector<16x16xf32>
    %106 = arith.select %22, %104, %105 : vector<16x16xi1>, vector<16x16xf32>
    %cst_48 = arith.constant dense<0xFF800000> : vector<16xf32>
    %107 = vector.multi_reduction <maximumf>, %106, %cst_48 [1] : vector<16x16xf32> to vector<16xf32>
    %108 = vector.shape_cast %107 : vector<16xf32> to vector<16x1xf32>
    %109 = vector.broadcast %108 : vector<16x1xf32> to vector<16x16xf32>
    %110 = arith.subf %106, %109 : vector<16x16xf32>
    %111 = math.exp %110 : vector<16x16xf32>
    %cst_49 = arith.constant dense<0.000000e+00> : vector<16xf32>
    %112 = vector.multi_reduction <add>, %111, %cst_49 [1] : vector<16x16xf32> to vector<16xf32>
    %113 = vector.shape_cast %112 : vector<16xf32> to vector<16x1xf32>
    %114 = tpu.reciprocal %113 {approx = true} : vector<16x1xf32> -> vector<16x1xf32>
    %115 = vector.broadcast %114 : vector<16x1xf32> to vector<16x16xf32>
    %116 = arith.mulf %111, %115 : vector<16x16xf32>
    %117 = arith.truncf %116 : vector<16x16xf32> to vector<16x16xbf16>
    %cst_50 = arith.constant dense<0.000000e+00> : vector<16x8xf32>
    %118 = tpu.matmul %117, %101, %cst_50 {dimension_numbers = #tpu.dot_dimension_numbers<[1], [0], [0], [1], [0, 0, 1, 1], [], []>} : vector<16x16xbf16>, vector<16x8xbf16>, vector<16x8xf32> -> vector<16x8xf32>
    %119 = arith.truncf %118 : vector<16x8xf32> to vector<16x8xbf16>
    %c3 = arith.constant 3 : index
    %c0_51 = arith.constant 0 : index
    %c0_52 = arith.constant 0 : index
    %120 = vector.load %arg8[%c3, %c0_51, %c0_52] : memref<4x8x32xbf16, #tpu.memory_space<vmem>>, vector<1x8x32xbf16>
    %121 = vector.shape_cast %120 : vector<1x8x32xbf16> to vector<8x32xbf16>
    %cst_53 = arith.constant dense<0.000000e+00> : vector<16x32xf32>
    %122 = tpu.matmul %119, %121, %cst_53 {dimension_numbers = #tpu.dot_dimension_numbers<[1], [0], [0], [1], [0, 0, 1, 1], [], []>} : vector<16x8xbf16>, vector<8x32xbf16>, vector<16x32xf32> -> vector<16x32xf32>
    %123 = arith.addf %98, %122 : vector<16x32xf32>
    %c0_54 = arith.constant 0 : index
    %c0_55 = arith.constant 0 : index
    %124 = vector.load %arg9[%c0_54, %c0_55] : memref<1x32xf32, #tpu.memory_space<vmem>>, vector<1x32xf32>
    %125 = vector.broadcast %124 : vector<1x32xf32> to vector<16x32xf32>
    %126 = arith.addf %123, %125 : vector<16x32xf32>
    %c0_56 = arith.constant 0 : index
    %c0_57 = arith.constant 0 : index
    %c0_58 = arith.constant 0 : index
    %127 = vector.load %arg10[%c0_56, %c0_57, %c0_58] : memref<1x16x32xf32, #tpu.memory_space<vmem>>, vector<1x16x32xf32>
    %128 = vector.shape_cast %127 : vector<1x16x32xf32> to vector<16x32xf32>
    %129 = vector.shape_cast %126 : vector<16x32xf32> to vector<1x16x32xf32>
    tpu.vector_store %arg10[%c0_56, %c0_57, %c0_58], %129 {strides = array<i32>} : memref<1x16x32xf32, #tpu.memory_space<vmem>>, vector<1x16x32xf32>,
    return
  }
  func.func @transform_0(%arg0: i32) -> (i32, i32, i32) {
    %c0_i32 = arith.constant 0 : i32
    %c0_i32_0 = arith.constant 0 : i32
    %c0_i32_1 = arith.constant 0 : i32
    return %arg0, %c0_i32, %c0_i32_0 : i32, i32, i32
  }
  func.func @transform_1(%arg0: i32) -> (i32, i32) {
    %c0_i32 = arith.constant 0 : i32
    %c0_i32_0 = arith.constant 0 : i32
    %c0_i32_1 = arith.constant 0 : i32
    return %c0_i32, %c0_i32_0 : i32, i32
  }
  func.func @transform_2(%arg0: i32) -> (i32, i32) {
    %c0_i32 = arith.constant 0 : i32
    %c0_i32_0 = arith.constant 0 : i32
    %c0_i32_1 = arith.constant 0 : i32
    return %c0_i32, %c0_i32_0 : i32, i32
  }
  func.func @transform_3(%arg0: i32) -> (i32, i32) {
    %c0_i32 = arith.constant 0 : i32
    %c0_i32_0 = arith.constant 0 : i32
    %c0_i32_1 = arith.constant 0 : i32
    return %c0_i32, %c0_i32_0 : i32, i32
  }
  func.func @transform_4(%arg0: i32) -> (i32, i32) {
    %c0_i32 = arith.constant 0 : i32
    %c0_i32_0 = arith.constant 0 : i32
    %c0_i32_1 = arith.constant 0 : i32
    return %c0_i32, %c0_i32_0 : i32, i32
  }
  func.func @transform_5(%arg0: i32) -> (i32, i32) {
    %c0_i32 = arith.constant 0 : i32
    %c0_i32_0 = arith.constant 0 : i32
    %c0_i32_1 = arith.constant 0 : i32
    return %c0_i32, %c0_i32_0 : i32, i32
  }
  func.func @transform_6(%arg0: i32) -> (i32, i32) {
    %c0_i32 = arith.constant 0 : i32
    %c0_i32_0 = arith.constant 0 : i32
    %c0_i32_1 = arith.constant 0 : i32
    return %c0_i32, %c0_i32_0 : i32, i32
  }
  func.func @transform_7(%arg0: i32) -> (i32, i32, i32) {
    %c0_i32 = arith.constant 0 : i32
    %c0_i32_0 = arith.constant 0 : i32
    %c0_i32_1 = arith.constant 0 : i32
    %c0_i32_2 = arith.constant 0 : i32
    return %c0_i32, %c0_i32_0, %c0_i32_1 : i32, i32, i32
  }
  func.func @transform_8(%arg0: i32) -> (i32, i32) {
    %c0_i32 = arith.constant 0 : i32
    %c0_i32_0 = arith.constant 0 : i32
    %c0_i32_1 = arith.constant 0 : i32
    return %c0_i32, %c0_i32_0 : i32, i32
  }
  func.func @transform_9(%arg0: i32) -> (i32, i32, i32) {
    %c0_i32 = arith.constant 0 : i32
    %c0_i32_0 = arith.constant 0 : i32
    %c0_i32_1 = arith.constant 0 : i32
    return %arg0, %c0_i32, %c0_i32_0 : i32, i32, i32
  }
}

</mosaic_0001>

<bundles_post_ra>
// kernel: tpu_custom_call.1
= control target key start
LH: loop header
LB: loop body
LE: loop exit
PB: predicated region body
PF: predicated region fallthrough
CT: control target
= control target key end

     0   :  { %s2450_s0 = inlined_call_operand.hbm [shape: bf16[2,16,32], index: 0, kind: input, shape index: {}]   ;;  %s2451_s1 = inlined_call_operand.hbm [shape: bf16[32,32], index: 1, kind: input, shape index: {}]   ;;  %s2452_s2 = inlined_call_operand.hbm [shape: bf16[32,32], index: 2, kind: input, shape index: {}]   ;;  %s2453_s3 = inlined_call_operand.hbm [shape: bf16[32,32], index: 3, kind: input, shape index: {}]   ;;  %s2454_s4 = inlined_call_operand.vmem [shape: f32[1,32], index: 4, kind: input, shape index: {}]   ;;  %s2455_s5 = inlined_call_operand.vmem [shape: f32[1,32], index: 5, kind: input, shape index: {}]   ;;  %s2456_s6 = inlined_call_operand.vmem [shape: f32[1,32], index: 6, kind: input, shape index: {}]   ;;  %s2457_s7 = inlined_call_operand.vmem [shape: bf16[4,8,32], index: 7, kind: input, shape index: {}]   ;;  %s2458_s8 = inlined_call_operand.vmem [shape: f32[1,32], index: 8, kind: input, shape index: {}]   ;;  %s2459_s9 = inlined_call_operand.hbm [shape: f32[2,16,32], index: 9, kind: output, shape index: {}]  }
   0x1   :  { %2466 = sst [smem:[#allocation17_spill]] %s2459_s9 }
   0x2   :  { %14 = vsyncpa [#allocation3], 0 }
   0x3   :  { %16 = vsyncpa [#allocation3 + $0x1], 0 }
   0x4   :  { %17 = vsyncpa [#allocation6], 0 }
   0x5   :  { %18 = vsyncpa [#allocation9], 0 }
   0x6   :  { %19 = vsyncpa [#allocation4], 0 }
   0x7   :  { %21 = vsyncpa [#allocation4 + $0x1], 0  ;;  %s1997_s30 = smov 0   ;;  %s1999_s10 = smov 0  }
   0x8   :  { %s2001_s11 = smov 0   ;;  %s2003_s12 = smov 0  }
   0x9 LB: > { %2467 = sst [smem:[#allocation15_spill]] %s1919_s30  ;;  %s2018_s13 = sadd.s32 4294967295, %s1931_s12   ;;  %s1931_s12 = sphi %s2003_s12, %s2491_s12   ;;  %s1927_s11 = sphi %s2001_s11, %s2490_s11   ;;  %s1923_s10 = sphi %s1999_s10, %s2489_s10   ;;  %s1919_s30 = sphi %s1997_s30, %s2488_s30  }
   0xa   : > { %s1438_s14 = sadd.s32 4294967294, %s1931_s12   ;;  %p47_p0 = scmp.ne.s32.totalorder %s1923_s10, %s1919_s30 }
   0xb   : > { %p2460_p1 = scmp.eq.s32.totalorder %s2018_s13, 0  ;;  %p245_p3 = scmp.eq.s32.totalorder %s1438_s14, 1 }
   0xc   : > { %p1439_p5 = scmp.ge.s32.totalorder %s1931_s12, 1  ;;  %p252_p7 = scmp.lt.s32.totalorder %s1931_s12, 3 }
   0xd   : > { %p2027_p4 = por %p2460_p1, %p47_p0  ;;  %p2032_p6 = por %p245_p3, %p47_p0 }
   0xe   : > { %p2037_p8 = pnand %p1439_p5, %p252_p7  ;;  %s1933_s18 = smov [#allocation5]  }
   0xf   : > { %s2468_s15 = scalar_select %p2027_p4, 1, 0 }
  0x10   : > { %s2469_s16 = scalar_select %p2032_p6, 1, 0 }
  0x11   : > { %s2471_s17 = scalar_select %p2037_p8, 1, 0 }
  0x12   : > { %2470 = sst [smem:[#allocation16_spill]] %s2469_s16  ;;  %s264_s19 = sshll.u32 %s1933_s18, 4  ;;  %s2041_s19 = int_to_ptr.vmem [resolvable:$true] %s264_s19 }
  0x13   : > { %p1634_p9 = pneg %p2037_p8  ;;  %s1934_s21 = smov [#allocation7]  }
  0x14   : > { %s277_s22 = sshll.u32 %s1934_s21, 4  ;;  %s1935_s23 = smov [#allocation8]   ;;  %s2052_s22 = int_to_ptr.vmem [resolvable:$true] %s277_s22 }
  0x15   : > { %p2048_p11 = pnand %p1634_p9, %p2460_p1  ;;  %s2054_s24 = sshll.u32 %s1935_s23, 4  ;;  %s291_s24 = int_to_ptr.vmem [resolvable:$true] %s2054_s24 }
  0x16   : > { %s1743_s27 = scalar_lea.hbm %s2451_s1, 256 }
  0x17   : > { %p1744_p12 = scmp.ne.s32.totalorder %s2451_s1, %s1743_s27  ;;  %p2064_p13 = pneg %p2048_p11 }
  0x18   : > { %p1750_p5 = scmp.lt.u32.totalorder %s1743_s27, %s2451_s1 }
  0x19   : > { %p1746_p0 = pnand %p2064_p13, %p1744_p12 }
  0x1b   : > { %p1747_p3 = pneg %p1746_p0 }
  0x1d   : > { %p1752_p7 = pnand %p1750_p5, %p1747_p3 }
  0x1f   : > { %1755 = shalt.err (!%p1752_p7)
}
  0x20   : > { %s1756_s23 = scalar_lea.vmem %s2041_s19, 256  ;;  %p1764_p2 = scmp.lt.s32.totalorder %s2041_s19, %s2041_s19 }
  0x21   : > { %p1757_p9 = scmp.ne.s32.totalorder %s2041_s19, %s1756_s23  ;;  %p1765_p6 = scmp.lt.s32.totalorder %s1756_s23, %s1756_s23 }
  0x23   : > { %p1759_p10 = pnand %p1757_p9, %p2064_p13  ;;  %p1766_p12 = por %p1765_p6, %p1764_p2 }
  0x25   : > { %p1760_p1 = pneg %p1759_p10 }
  0x27   : > { %p1767_p0 = pnand %p1766_p12, %p1760_p1 }
  0x29   : > { %1770 = shalt.err (!%p1767_p0)
}
  0x2a   : > { %s1936_s25 = smov 64   ;;  %s1937_s26 = smov 4  }
  0x2b   : > { %1637 = dma.hbm_to_vmem [thread:$0]  (!%p2048_p11), %s2451_s1, 256, %s2041_s19, [#allocation6], %s1936_s25, %s1936_s25, %s1937_s26  }
  0x2c   : > { %s1771_s21 = scalar_lea.hbm %s2452_s2, 256 }
  0x2d   : > { %p1772_p1 = scmp.ne.s32.totalorder %s2452_s2, %s1771_s21  ;;  %p1778_p10 = scmp.lt.u32.totalorder %s1771_s21, %s2452_s2 }
  0x2f   : > { %p1774_p2 = pnand %p1772_p1, %p2064_p13 }
  0x31   : > { %p1775_p6 = pneg %p1774_p2 }
  0x33   : > { %p1780_p3 = pnand %p1778_p10, %p1775_p6 }
  0x35   : > { %1783 = shalt.err (!%p1780_p3)
}
  0x36   : > { %s1784_s19 = scalar_lea.vmem %s2052_s22, 256  ;;  %p1792_p12 = scmp.lt.s32.totalorder %s2052_s22, %s2052_s22 }
  0x37   : > { %p1785_p5 = scmp.ne.s32.totalorder %s2052_s22, %s1784_s19  ;;  %p1793_p0 = scmp.lt.s32.totalorder %s1784_s19, %s1784_s19 }
  0x39   : > { %p1787_p7 = pnand %p1785_p5, %p2064_p13  ;;  %p1794_p1 = por %p1793_p0, %p1792_p12 }
  0x3b   : > { %p1788_p9 = pneg %p1787_p7 }
  0x3d   : > { %p1795_p2 = pnand %p1794_p1, %p1788_p9 }
  0x3f   : > { %1798 = shalt.err (!%p1795_p2)
}
  0x40   : > { %1640 = dma.hbm_to_vmem [thread:$0]  (!%p2048_p11), %s2452_s2, 256, %s2052_s22, [#allocation6], %s1936_s25, %s1936_s25, %s1937_s26  }
  0x41   : > { %s1799_s28 = scalar_lea.hbm %s2453_s3, 256 }
  0x42   : > { %p1800_p6 = scmp.ne.s32.totalorder %s2453_s3, %s1799_s28  ;;  %p1806_p5 = scmp.lt.u32.totalorder %s1799_s28, %s2453_s3 }
  0x44   : > { %p1802_p10 = pnand %p1800_p6, %p2064_p13 }
  0x46   : > { %p1803_p3 = pneg %p1802_p10 }
  0x48   : > { %p1808_p7 = pnand %p1806_p5, %p1803_p3 }
  0x4a   : > { %1811 = shalt.err (!%p1808_p7)
}
  0x4b   : > { %s1812_s19 = scalar_lea.vmem %s291_s24, 256  ;;  %p1820_p1 = scmp.lt.s32.totalorder %s291_s24, %s291_s24 }
  0x4c   : > { %p1813_p9 = scmp.ne.s32.totalorder %s291_s24, %s1812_s19  ;;  %p1821_p2 = scmp.lt.s32.totalorder %s1812_s19, %s1812_s19 }
  0x4e   : > { %p1815_p12 = pnand %p1813_p9, %p2064_p13  ;;  %p1822_p4 = por %p1821_p2, %p1820_p1 }
  0x50   : > { %p1816_p0 = pneg %p1815_p12 }
  0x52   : > { %p1823_p8 = pnand %p1822_p4, %p1816_p0 }
  0x54   : > { %1826 = shalt.err (!%p1823_p8)
}
  0x55   : > { %1643 = dma.hbm_to_vmem [thread:$0]  (!%p2048_p11), %s2453_s3, 256, %s291_s24, [#allocation9], %s1936_s25, %s1936_s25, %s1937_s26  }
  0x56   : > { %s2137_s14 = sadd.s32 1, %s1931_s12   ;;  %s34_s30 = sadd.s32 1, %s1927_s11 }
  0x57   : > { %s31_s20 = ssub.s32 %s1931_s12, %s2137_s14  ;;  %p41_p8 = scmp.ne.s32.totalorder %s1927_s11, %s1923_s10 }
  0x58   : > { %p32_p4 = scmp.eq.s32.totalorder %s31_s20, 0  ;;  %p42_p13 = scmp.eq.s32.totalorder %s1931_s12, 0 }
  0x59   : > { %p1655_p6 = scmp.lt.s32.totalorder %s1931_s12, 2  ;;  %p2474_p3 = scmp.eq.s32.totalorder %s2018_s13, 1 }
  0x5a   : > { %s2147_s16 = scalar_select %p32_p4, %s1927_s11, %s34_s30  }
  0x5b   : > { %p43_p10 = por %p42_p13, %p41_p8  ;;  %p2151_p5 = por %p2474_p3, %p41_p8 }
  0x5c   : > { %s319_s28 = sand.u32 1, %s1927_s11   ;;  %s1487_s29 = sshll.u32 %s1931_s12, 7 }
  0x5d   : > { %s1444_s24 = sshll.u32 %s319_s28, 3  ;;  %s2160_s23 = scalar_lea.hbm %s2450_s0, %s1487_s29 }
  0x5e   : > { %s323_s19 = scalar_lea.vmem [#allocation2], %s1444_s24  ;;  %p2162_p11 = pnand %p1655_p6, %p43_p10 }
  0x5f   : > { %s330_s22 = sshll.u32 %s323_s19, 4  ;;  %s2168_s20 = scalar_lea.sflag [#allocation3], %s319_s28  ;;  %s2166_s22 = int_to_ptr.vmem [resolvable:$true] %s330_s22 }
  0x60   : > { %s1827_s30 = scalar_lea.hbm %s2160_s23, 128  ;;  %p1829_p9 = pneg %p2162_p11 }
  0x61   : > { %p1828_p7 = scmp.ne.s32.totalorder %s2160_s23, %s1827_s30  ;;  %s1832_s18 = scalar_lea.hbm %s2450_s0, 256 }
  0x62   : > { %p1833_p1 = scmp.lt.u32.totalorder %s2160_s23, %s2450_s0  ;;  %p1834_p2 = scmp.lt.u32.totalorder %s1832_s18, %s1827_s30 }
  0x63   : > { %p1830_p12 = pnand %p1829_p9, %p1828_p7  ;;  %p1836_p8 = scmp.lt.u32.totalorder %s1827_s30, %s2160_s23 }
  0x64   : > { %p1835_p4 = por %p1834_p2, %p1833_p1 }
  0x65   : > { %p1831_p0 = pneg %p1830_p12 }
  0x66   : > { %p1837_p13 = por %p1836_p8, %p1835_p4 }
  0x68   : > { %p1838_p6 = pnand %p1837_p13, %p1831_p0 }
  0x6a   : > { %1841 = shalt.err (!%p1838_p6)
}
  0x6b   : > { %s1842_s28 = scalar_lea.vmem %s2166_s22, 128  ;;  %s1938_s29 = smov [#allocation2]  }
  0x6c   : > { %p1843_p10 = scmp.ne.s32.totalorder %s2166_s22, %s1842_s28  ;;  %s1847_s24 = sshll.u32 %s1938_s29, 4  ;;  %s1848_s24 = int_to_ptr.vmem [resolvable:$false] %s1847_s24 }
  0x6d   : > { %s1849_s21 = scalar_lea.vmem %s1848_s24, 256  ;;  %p1850_p12 = scmp.lt.s32.totalorder %s2166_s22, %s1848_s24 }
  0x6e   : > { %p1845_p3 = pnand %p1843_p10, %p1829_p9  ;;  %p1851_p1 = scmp.lt.s32.totalorder %s1849_s21, %s1842_s28 }
  0x70   : > { %p1846_p7 = pneg %p1845_p3  ;;  %p1852_p2 = por %p1851_p1, %p1850_p12 }
  0x72   : > { %p1853_p4 = pnand %p1852_p2, %p1846_p7 }
  0x74   : > { %1856 = shalt.err (!%p1853_p4)
}
  0x75   : > { %1647 = dma.hbm_to_vmem [thread:$0]  (!%p2162_p11), %s2160_s23, 128, %s2166_s22, %s2168_s20, %s1936_s25, %s1936_s25, %s1937_s26  }
  0x76   : > { %p2477_p9 = scmp.ne.s32.totalorder %s2471_s17, 0 }
  0x77   : > { %s2202_s30 = sand.u32 (!%p2477_p9), 1, %s1923_s10   ;;  %p2478_p0 = scmp.ne.s32.totalorder (!%p2477_p9), %s2468_s15, 0 }
  0x78   : > { %342 = sbr.rel (%p2477_p9) target bundleno = 2771 (0xad3), region = 56  ;;  %s1448_s18 = sshll.u32 (!%p2477_p9), %s2202_s30, 3 }
  0x79   : > { %s345_s19 = scalar_lea.sflag (!%p2477_p9), [#allocation3], %s2202_s30  ;;  %s348_s28 = scalar_lea.vmem (!%p2477_p9), [#allocation2], %s1448_s18 }
  0x7f   : > { %1902 = dma.done.wait (%p2478_p0), %s345_s19, 128  }
  0x80   : > { %1904 = vsyncadd (%p2478_p0), %s345_s19, 4294967168  ;;  %p2479_p8 = scmp.eq.s32.totalorder %s2018_s13, 0 }
  0x82   : > { %1906 = dma.done.wait (%p2479_p8), [#allocation6], 512   ;;  %p2480_p11 = pmov %p2479_p8 }
  0x83   : > { %p2481_p13 = pmov %p2479_p8 }
  0x84   : > { %1908 = vsyncadd (%p2480_p11), [#allocation6], 4294966784 }
  0x85   : > { %1910 = dma.done.wait (%p2481_p13), [#allocation9], 256   ;;  %p2482_p6 = pmov %p2479_p8 }
  0x86   : > { %v1939_v0 = vmov 0.0   ;;  %vm1940_vm0 = vmmov 0   ;;  %v1704_v1 = vld [vmem:[#allocation7] sm:$0xff]   ;;  %v1705_v2 = vld [vmem:[#allocation7 + $0x8] sm:$0xff]   ;;  %v1706_v3 = vld [vmem:[#allocation5] sm:$0xff]   ;;  %vm426_vm1 = vcmask 261120   ;;  %v602_v28 = vlaneseq }
  0x87   : > { %1912 = vsyncadd (%p2482_p6), [#allocation9], 4294967040  ;;  %1530 = vmatprep.subr.bf16.mxu1 %v1939_v0  ;;  %1522 = vmatprep.subr.bf16.mxu0 %v1939_v0  ;;  %v1708_v4 = vld [vmem:[#allocation5 + $0x8] sm:$0xff]   ;;  %v1707_v5 = vld [vmem:[%s348_s28] sm:$0xff]   ;;  %vm609_vm2 = vcmask 64512   ;;  %s1941_s23 = smov 120  }
  0x88   : > { %1534 = vmatprep.mubr.msk.bf16.mxu1 %vm1940_vm0, %v1939_v0  ;;  %1526 = vmatprep.mubr.msk.bf16.mxu0 %vm1940_vm0, %v1939_v0  ;;  %v1458_v6 = vld [vmem:[%s2455_s5] ss:$0 sm:$0xff]  ;;  %v1709_v23 = vld [vmem:[#allocation8] sm:$0xff]   ;;  %v1710_v24 = vld [vmem:[#allocation8 + $0x8] sm:$0xff]   ;;  %v2265_v29 = vshrl.u32 %v602_v28, 7  ;;  %v2267_v30 = vand.u32 127, %v602_v28 }
  0x89   : > { %1531 = vmatpush3.bf16.msra.mxu1 %v1704_v1  ;;  %1523 = vmatpush3.bf16.msra.mxu0 %v1706_v3  ;;  %v1453_v8 = vld [vmem:[%s2454_s4] ss:$0 sm:$0xff]  ;;  %vm661_vm4 = vcmask 130048   ;;  %s1942_s22 = smov 112   ;;  %vm865_vm6 = vcmask 1043456   ;;  %s1943_s19 = smov 104  }
  0x8a   : > { %1532 = vmatprep.subr.bf16.mxu1 %v1939_v0  ;;  %1524 = vmatprep.subr.bf16.mxu0 %v1939_v0  ;;  %v2270_v31 = vadd.s32 8, %v2265_v29  ;;  %vm607_vm3 = vcmp.le.s32.totalorder %v2267_v30, %v2265_v29  ;;  %v1462_v58 = vld [vmem:[%s2456_s6] ss:$0 sm:$0xff]  ;;  %s1452_s26 = sshll.u32 %s2202_s30, 4  ;;  %s1488_s9 = sshll.u32 %s2018_s13, 8 }
  0x8b   : > { %s394_s20 = scalar_lea.vmem [#allocation10], %s1452_s26  ;;  %s2483_s18 = sld [smem:[#allocation17_spill]] }
  0x8c   : > { %vm608_vm5 = vcmp.le.s32.totalorder %v2267_v30, %v2270_v31  ;;  %s1336_s29 = sshll.u32 %s394_s20, 4  ;;  %s1323_s13 = scalar_lea.sflag [#allocation4], %s2202_s30  ;;  %s2404_s29 = int_to_ptr.vmem [resolvable:$true] %s1336_s29 }
  0x8d   : > { %1533 = vmatpush3.bf16.msra.mxu1 %v1705_v2  ;;  %1525 = vmatpush3.bf16.msra.mxu0 %v1708_v4  ;;  %s1857_s28 = scalar_lea.vmem %s2404_s29, 256  ;;  %s1944_s15 = smov [#allocation10]  }
  0x8e   : > { %1546 = vmatprep.subr.bf16.mxu1 %v1939_v0  ;;  %1538 = vmatprep.subr.bf16.mxu0 %v1939_v0  ;;  %p1858_p10 = scmp.ne.s32.totalorder %s2404_s29, %s1857_s28  ;;  %s1861_s17 = sshll.u32 %s1944_s15, 4  ;;  %s1862_s17 = int_to_ptr.vmem [resolvable:$false] %s1861_s17 }
  0x8f   : > { %s1863_s25 = scalar_lea.vmem %s1862_s17, 512  ;;  %p1864_p12 = scmp.lt.s32.totalorder %s2404_s29, %s1862_s17 }
  0x90   : > { %1535 = vmatmul.mubr.msk.bf16.vlgmr.msra.gmra.mrb[0].mxu1 %vm426_vm1, %v1707_v5  ;;  %1527 = vmatmul.mubr.msk.bf16.vlgmr.msra.gmra.mrb[0].mxu0 %vm426_vm1, %v1707_v5  ;;  %p1859_p3 = pnand %p1858_p10, %p2151_p5  ;;  %p1865_p1 = scmp.lt.s32.totalorder %s1863_s25, %s1857_s28 }
  0x91   : > { %1548 = vmatprep.mubr.msk.bf16.mxu1 %vm1940_vm0, %v1939_v0  ;;  %1542 = vmatprep.mubr.msk.bf16.mxu0 %vm1940_vm0, %v1939_v0 }
  0x92   : > { %1539 = vmatpush3.bf16.msra.mxu0 %v1709_v23  ;;  %p1860_p7 = pneg %p1859_p3  ;;  %p1866_p2 = por %p1865_p1, %p1864_p12 }
  0x93   : > { %1540 = vmatprep.subr.bf16.mxu0 %v1939_v0 }
  0x94   : > { %p1867_p4 = pnand %p1866_p2, %p1860_p7 }
  0x96   : > { %1541 = vmatpush3.bf16.msra.mxu0 %v1710_v24 }
  0x97   : > { %1552 = vmatprep.subr.bf16.mxu0 %v1939_v0 }
  0x99   : > { %1543 = vmatmul.mubr.msk.bf16.vlgmr.msra.gmra.mrb[4].mxu0 %vm426_vm1, %v1707_v5 }
  0x9a   : > { %1554 = vmatprep.mubr.msk.bf16.mxu0 %vm1940_vm0, %v1939_v0 }
 0x163   : > { %v528_v7 = vpop.f32.mrb[0].mxu1  ;;  %v464_v11 = vpop.f32.mrb[0].mxu0 }
 0x164   : > { %v1536_v9 = vpop.f32.mrb[1].mxu1  ;;  %v529_v12 = vadd.f32 %v1458_v6, %v528_v7  ;;  %v465_v15 = vadd.f32 %v1453_v8, %v464_v11  ;;  %v1528_v16 = vpop.f32.mrb[1].mxu0 }
 0x165   : > { %v531_v10 = vpop.f32.mrb[2].mxu1  ;;  %v467_v17 = vpop.f32.mrb[2].mxu0 }
 0x166   : > { %v532_v13 = vadd.f32 %v1458_v6, %v531_v10  ;;  %v1537_v14 = vpop.f32.mrb[3].mxu1  ;;  %v468_v19 = vadd.f32 %v1453_v8, %v467_v17  ;;  %v1529_v20 = vpop.f32.mrb[3].mxu0 }
 0x168   : > { %v2240_v18 = vpack.c.bf16 %v532_v13, %v529_v12  ;;  %v2244_v21 = vpack.c.bf16 %v468_v19, %v465_v15 }
 0x16a   : > { %735 = vrot.lane.b32.xlu0 %v2240_v18, %s1941_s23  ;;  %v614_v22 = vsel %vm609_vm2, %v2240_v18, 0 }
 0x16b   : > { %1547 = vmatpush3.bf16.xpose.msra.mxu1 %v614_v22 }
 0x16c   : > { %1558 = vmatprep.subr.bf16.mxu1 %v1939_v0  ;;  %v592_v59 = vpop.f32.mrb[4].mxu0 }
 0x16d   : > { %v593_v60 = vadd.f32 %v1462_v58, %v592_v59  ;;  %v1544_v61 = vpop.f32.mrb[5].mxu0 }
 0x16e   : > { %732 = vrot.lane.b32.xlu0 %v2244_v21, %s1941_s23  ;;  %v595_v62 = vpop.f32.mrb[6].mxu0 }
 0x16f   : > { %v596_v63 = vadd.f32 %v1462_v58, %v595_v62  ;;  %v1545_v1 = vpop.f32.mrb[7].mxu0 }
 0x171   : > { %v2297_v2 = vpack.c.bf16 %v596_v63, %v593_v60 }
 0x172   : > { %1549 = vmatmul.mubr.msk.bf16.vlgmr.msra.gmra.mrb[4].mxu1 %vm609_vm2, %v2244_v21 }
 0x173   : > { %1560 = vmatprep.mubr.msk.bf16.mxu1 %vm1940_vm0, %v1939_v0  ;;  %1553 = vmatpush3.bf16.msra.mxu0 %v2297_v2 }
 0x174   : > { %1564 = vmatprep.subr.bf16.mxu0 %v1939_v0 }
 0x1dc   : > { %v736_v25 = vpop.permute.xlu0 %735 }
 0x1dd   : > { %v741_v26 = vsel %vm609_vm2, %v736_v25, 0 }
 0x1de   : > { %1559 = vmatpush3.bf16.xpose.msra.mxu1 %v741_v26  ;;  %v1470_v26 = vld [vmem:[%s2457_s7 + $0x4] sm:$0xf] }
 0x1df   : > { %1570 = vmatprep.subr.bf16.mxu1 %v1939_v0 }
 0x1e0   : > { %v733_v27 = vpop.permute.xlu0 %732 }
 0x1e5   : > { %1561 = vmatmul.mubr.msk.bf16.vlgmr.msra.gmra.mrb[8].mxu1 %vm609_vm2, %v733_v27  ;;  %v867_v27 = vsel %vm865_vm6, %v1470_v26, 0 }
 0x1e6   : > { %1572 = vmatprep.mubr.msk.bf16.mxu1 %vm1940_vm0, %v1939_v0  ;;  %1571 = vmatpush3.bf16.msra.mxu1 %v867_v27 }
 0x1e7   : > { %1582 = vmatprep.subr.bf16.mxu1 %v1939_v0 }
 0x245   : > { %v650_v32 = vpop.f32.mrb[4].mxu1 }
 0x246   : > { %v657_v33 = vmul.f32 0.35355338, %v650_v32  ;;  %v1550_v34 = vpop.f32.mrb[5].mxu1 }
 0x247   : > { %v653_v35 = vpop.f32.mrb[6].mxu1 }
 0x248   : > { %v658_v36 = vmul.f32 0.35355338, %v653_v35  ;;  %v1551_v37 = vpop.f32.mrb[7].mxu1  ;;  %v659_v38 = vsel %vm607_vm3, %v657_v33, -1e+30 }
 0x249   : > { %v662_v39 = vsel %vm661_vm4, %v659_v38, -inf }
 0x24a   : > { %663 = vmax.xlane.f32.xlu1 %v662_v39  ;;  %v660_v40 = vsel %vm608_vm5, %v658_v36, -1e+30  ;;  %v730_v36 = vld [vmem:[%s2457_s7] sm:$0xf] }
 0x24b   : > { %v665_v41 = vsel %vm661_vm4, %v660_v40, -inf }
 0x24e   : > { %666 = vmax.xlane.f32.xlu1 %v665_v41 }
 0x2b8   : > { %v777_v42 = vpop.f32.mrb[8].mxu1 }
 0x2b9   : > { %v784_v43 = vmul.f32 0.35355338, %v777_v42  ;;  %v1562_v44 = vpop.f32.mrb[9].mxu1 }
 0x2ba   : > { %v780_v45 = vpop.f32.mrb[10].mxu1 }
 0x2bb   : > { %v785_v46 = vmul.f32 0.35355338, %v780_v45  ;;  %v1563_v47 = vpop.f32.mrb[11].mxu1  ;;  %v786_v48 = vsel %vm607_vm3, %v784_v43, -1e+30 }
 0x2bc   : > { %v788_v49 = vsel %vm661_vm4, %v786_v48, -inf }
 0x2bd   : > { %789 = vmax.xlane.f32.xlu0 %v788_v49  ;;  %v787_v50 = vsel %vm608_vm5, %v785_v46, -1e+30 }
 0x2be   : > { %v791_v51 = vsel %vm661_vm4, %v787_v50, -inf }
 0x2bf   : > { %792 = vmax.xlane.f32.xlu1 %v791_v51 }
 0x2d3   : > { %959 = vrot.lane.b32.xlu0 %v2240_v18, %s1942_s22 }
 0x2d7   : > { %v664_v52 = vpop.xlane.xlu1 %663 }
 0x2d8   : > { %v668_v53 = vsub.f32 %v659_v38, %v664_v52 }
 0x2da   : > { %v670_v54 = vmul.f32 1.442695, %v668_v53 }
 0x2db   : > { %v667_v55 = vpop.xlane.xlu1 %666 }
 0x2dc   : > { %1711 = vpow2.f32 %v670_v54  ;;  %v669_v56 = vsub.f32 %v660_v40, %v667_v55  ;;  %v914_v40 = vsel %vm865_vm6, %v730_v36, 0 }
 0x2de   : > { %v672_v57 = vmul.f32 1.442695, %v669_v56 }
 0x2e0   : > { %1713 = vpow2.f32 %v672_v57 }
 0x2e6   : > { %v1712_v3 = vpop.eup %1711 }
 0x2e7   : > { %v674_v4 = vsel %vm661_vm4, %v1712_v3, 0.0 }
 0x2e8   : > { %675 = vadd.xlane.f32.xlu1 %v674_v4 }
 0x2ea   : > { %v1714_v5 = vpop.eup %1713 }
 0x2eb   : > { %v677_v6 = vsel %vm661_vm4, %v1714_v5, 0.0 }
 0x2ec   : > { %678 = vadd.xlane.f32.xlu1 %v677_v6 }
 0x34a   : > { %v790_v7 = vpop.xlane.xlu0 %789 }
 0x34b   : > { %v794_v8 = vsub.f32 %v786_v48, %v790_v7 }
 0x34c   : > { %v793_v9 = vpop.xlane.xlu1 %792 }
 0x34d   : > { %v796_v10 = vmul.f32 1.442695, %v794_v8  ;;  %v795_v11 = vsub.f32 %v787_v50, %v793_v9 }
 0x34e   : > { %v960_v48 = vpop.permute.xlu0 %959 }
 0x34f   : > { %1715 = vpow2.f32 %v796_v10  ;;  %v798_v12 = vmul.f32 1.442695, %v795_v11  ;;  %v965_v52 = vsel %vm609_vm2, %v960_v48, 0 }
 0x351   : > { %1717 = vpow2.f32 %v798_v12 }
 0x359   : > { %v1716_v13 = vpop.eup %1715 }
 0x35a   : > { %v800_v14 = vsel %vm661_vm4, %v1716_v13, 0.0 }
 0x35b   : > { %v1718_v15 = vpop.eup %1717  ;;  %801 = vadd.xlane.f32.xlu1 %v800_v14 }
 0x35c   : > { %v803_v16 = vsel %vm661_vm4, %v1718_v15, 0.0 }
 0x35f   : > { %804 = vadd.xlane.f32.xlu1 %v803_v16 }
 0x370   : > { %812 = vrot.lane.b32.xlu1 %v2297_v2, %s1941_s23 }
 0x374   : > { %957 = vrot.lane.b32.xlu1 %v2244_v21, %s1942_s22 }
 0x375   : > { %v676_v17 = vpop.xlane.xlu1 %675 }
 0x376   : > { %1719 = vrcp.f32 %v676_v17 }
 0x379   : > { %v679_v19 = vpop.xlane.xlu1 %678 }
 0x37a   : > { %1721 = vrcp.f32 %v679_v19 }
 0x380   : > { %v1720_v20 = vpop.eup %1719 }
 0x381   : > { %v682_v23 = vmul.f32 %v1720_v20, %v1712_v3 }
 0x384   : > { %v1722_v22 = vpop.eup %1721 }
 0x385   : > { %v683_v24 = vmul.f32 %v1722_v22, %v1714_v5 }
 0x387   : > { %v684_v25 = vpack.c.bf16 %v683_v24, %v682_v23 }
 0x389   : > { %1555 = vmatmul.mubr.msk.bf16.vlgmr.msra.gmra.mrb[8].mxu0 %vm661_vm4, %v684_v25 }
 0x38a   : > { %1566 = vmatprep.mubr.msk.bf16.mxu0 %vm1940_vm0, %v1939_v0 }
 0x3e8   : > { %v802_v28 = vpop.xlane.xlu1 %801 }
 0x3e9   : > { %1723 = vrcp.f32 %v802_v28 }
 0x3ec   : > { %v805_v32 = vpop.xlane.xlu1 %804 }
 0x3ed   : > { %1725 = vrcp.f32 %v805_v32 }
 0x3f0   : > { %v813_v33 = vpop.permute.xlu1 %812 }
 0x3f1   : > { %1565 = vmatpush3.bf16.msra.mxu0 %v813_v33 }
 0x3f2   : > { %1576 = vmatprep.subr.bf16.mxu0 %v1939_v0 }
 0x3f3   : > { %v1724_v34 = vpop.eup %1723 }
 0x3f4   : > { %v808_v37 = vmul.f32 %v1724_v34, %v1716_v13  ;;  %v958_v53 = vpop.permute.xlu1 %957 }
 0x3f7   : > { %v1726_v35 = vpop.eup %1725 }
 0x3f8   : > { %v809_v38 = vmul.f32 %v1726_v35, %v1718_v15 }
 0x3fa   : > { %v810_v39 = vpack.c.bf16 %v809_v38, %v808_v37 }
 0x3fc   : > { %1567 = vmatmul.mubr.msk.bf16.vlgmr.msra.gmra.mrb[12].mxu0 %vm661_vm4, %v810_v39 }
 0x3fd   : > { %1577 = vmatpush3.bf16.msra.mxu0 %v914_v40  ;;  %1578 = vmatprep.mubr.msk.bf16.mxu0 %vm1940_vm0, %v1939_v0 }
 0x3fe   : > { %1588 = vmatprep.subr.bf16.mxu0 %v1939_v0 }
 0x45c   : > { %v722_v41 = vpop.f32.mrb[8].mxu0 }
 0x45d   : > { %v1556_v42 = vpop.f32.mrb[9].mxu0 }
 0x45e   : > { %v725_v43 = vpop.f32.mrb[10].mxu0 }
 0x45f   : > { %v729_v44 = vpack.c.bf16 %v725_v43, %v722_v41  ;;  %v1557_v45 = vpop.f32.mrb[11].mxu0 }
 0x461   : > { %1579 = vmatmul.mubr.msk.bf16.vlgmr.msra.gmra.mrb[16].mxu0 %vm609_vm2, %v729_v44 }
 0x462   : > { %1590 = vmatprep.mubr.msk.bf16.mxu0 %vm1940_vm0, %v1939_v0 }
 0x4cf   : > { %v852_v46 = vpop.f32.mrb[12].mxu0 }
 0x4d0   : > { %v1568_v47 = vpop.f32.mrb[13].mxu0 }
 0x4d1   : > { %v855_v49 = vpop.f32.mrb[14].mxu0 }
 0x4d2   : > { %v859_v50 = vpack.c.bf16 %v855_v49, %v852_v46  ;;  %v1569_v51 = vpop.f32.mrb[15].mxu0 }
 0x4d4   : > { %1573 = vmatmul.mubr.msk.bf16.vlgmr.msra.gmra.mrb[12].mxu1 %vm609_vm2, %v859_v50 }
 0x4d5   : > { %1583 = vmatpush3.bf16.xpose.msra.mxu1 %v965_v52  ;;  %1584 = vmatprep.mubr.msk.bf16.mxu1 %vm1940_vm0, %v1939_v0 }
 0x4d6   : > { %1594 = vmatprep.subr.bf16.mxu1 %v1939_v0 }
 0x4dc   : > { %1585 = vmatmul.mubr.msk.bf16.vlgmr.msra.gmra.mrb[16].mxu1 %vm609_vm2, %v958_v53 }
 0x4dd   : > { %1596 = vmatprep.mubr.msk.bf16.mxu1 %vm1940_vm0, %v1939_v0 }
 0x534   : > { %v950_v54 = vpop.f32.mrb[16].mxu0 }
 0x535   : > { %v1580_v55 = vpop.f32.mrb[17].mxu0 }
 0x536   : > { %v953_v56 = vpop.f32.mrb[18].mxu0 }
 0x537   : > { %v1581_v57 = vpop.f32.mrb[19].mxu0 }
 0x5a7   : > { %v903_v58 = vpop.f32.mrb[12].mxu1 }
 0x5a8   : > { %v2337_v59 = vadd.f32 %v950_v54, %v903_v58  ;;  %v1574_v60 = vpop.f32.mrb[13].mxu1 }
 0x5a9   : > { %v906_v61 = vpop.f32.mrb[14].mxu1 }
 0x5aa   : > { %v2339_v62 = vadd.f32 %v953_v56, %v906_v61  ;;  %v1575_v63 = vpop.f32.mrb[15].mxu1 }
 0x5af   : > { %v1001_v1 = vpop.f32.mrb[16].mxu1 }
 0x5b0   : > { %v1008_v3 = vmul.f32 0.35355338, %v1001_v1  ;;  %v1586_v4 = vpop.f32.mrb[17].mxu1 }
 0x5b1   : > { %v1004_v5 = vpop.f32.mrb[18].mxu1 }
 0x5b2   : > { %v1009_v6 = vmul.f32 0.35355338, %v1004_v5  ;;  %v1587_v7 = vpop.f32.mrb[19].mxu1  ;;  %v1010_v8 = vsel %vm607_vm3, %v1008_v3, -1e+30 }
 0x5b3   : > { %v1012_v9 = vsel %vm661_vm4, %v1010_v8, -inf }
 0x5b4   : > { %1013 = vmax.xlane.f32.xlu1 %v1012_v9  ;;  %v1011_v10 = vsel %vm608_vm5, %v1009_v6, -1e+30 }
 0x5b5   : > { %v1015_v11 = vsel %vm661_vm4, %v1011_v10, -inf }
 0x5b6   : > { %1016 = vmax.xlane.f32.xlu0 %v1015_v11 }
 0x5cc   : > { %1035 = vrot.lane.b32.xlu0 %v2297_v2, %s1942_s22 }
 0x641   : > { %v1014_v12 = vpop.xlane.xlu1 %1013 }
 0x642   : > { %v1018_v13 = vsub.f32 %v1010_v8, %v1014_v12 }
 0x643   : > { %v1017_v14 = vpop.xlane.xlu0 %1016 }
 0x644   : > { %v1020_v15 = vmul.f32 1.442695, %v1018_v13  ;;  %v1019_v16 = vsub.f32 %v1011_v10, %v1017_v14 }
 0x646   : > { %1727 = vpow2.f32 %v1020_v15  ;;  %v1022_v17 = vmul.f32 1.442695, %v1019_v16 }
 0x647   : > { %v1036_v19 = vpop.permute.xlu0 %1035 }
 0x648   : > { %1729 = vpow2.f32 %v1022_v17  ;;  %1589 = vmatpush3.bf16.msra.mxu0 %v1036_v19  ;;  %v1481_v19 = vld [vmem:[%s2458_s8] ss:$0 sm:$0xff] }
 0x649   : > { %1600 = vmatprep.subr.bf16.mxu0 %v1939_v0 }
 0x650   : > { %v1728_v20 = vpop.eup %1727 }
 0x651   : > { %v1024_v22 = vsel %vm661_vm4, %v1728_v20, 0.0 }
 0x652   : > { %v1730_v23 = vpop.eup %1729  ;;  %1025 = vadd.xlane.f32.xlu1 %v1024_v22 }
 0x653   : > { %v1027_v24 = vsel %vm661_vm4, %v1730_v23, 0.0 }
 0x656   : > { %1028 = vadd.xlane.f32.xlu1 %v1027_v24 }
 0x667   : > { %1136 = vrot.lane.b32.xlu1 %v2240_v18, %s1943_s19 }
 0x66b   : > { %1134 = vrot.lane.b32.xlu1 %v2244_v21, %s1943_s19  ;;  %v1475_v21 = vld [vmem:[%s2457_s7 + $0x8] sm:$0xf] }
 0x66c   : > { %v1089_v37 = vsel %vm865_vm6, %v1475_v21, 0 }
 0x66d   : > { %1595 = vmatpush3.bf16.msra.mxu1 %v1089_v37 }
 0x66e   : > { %1606 = vmatprep.subr.bf16.mxu1 %v1939_v0 }
 0x6df   : > { %v1026_v25 = vpop.xlane.xlu1 %1025 }
 0x6e0   : > { %1731 = vrcp.f32 %v1026_v25 }
 0x6e3   : > { %v1029_v26 = vpop.xlane.xlu1 %1028 }
 0x6e4   : > { %1733 = vrcp.f32 %v1029_v26 }
 0x6e7   : > { %v1137_v34 = vpop.permute.xlu1 %1136 }
 0x6e8   : > { %v1142_v36 = vsel %vm609_vm2, %v1137_v34, 0 }
 0x6ea   : > { %v1732_v27 = vpop.eup %1731 }
 0x6eb   : > { %v1032_v32 = vmul.f32 %v1732_v27, %v1728_v20  ;;  %v1135_v18 = vpop.permute.xlu1 %1134 }
 0x6ee   : > { %v1734_v28 = vpop.eup %1733 }
 0x6ef   : > { %v1033_v33 = vmul.f32 %v1734_v28, %v1730_v23 }
 0x6f1   : > { %v1034_v35 = vpack.c.bf16 %v1033_v33, %v1032_v32 }
 0x6f3   : > { %1591 = vmatmul.mubr.msk.bf16.vlgmr.msra.gmra.mrb[20].mxu0 %vm661_vm4, %v1034_v35 }
 0x6f4   : > { %1601 = vmatpush3.bf16.xpose.msra.mxu0 %v1142_v36  ;;  %1602 = vmatprep.mubr.msk.bf16.mxu0 %vm1940_vm0, %v1939_v0 }
 0x6f5   : > { %1612 = vmatprep.subr.bf16.mxu0 %v1939_v0 }
 0x6fb   : > { %1603 = vmatmul.mubr.msk.bf16.vlgmr.msra.gmra.mrb[24].mxu0 %vm609_vm2, %v1135_v18 }
 0x6fc   : > { %1614 = vmatprep.mubr.msk.bf16.mxu0 %vm1940_vm0, %v1939_v0 }
 0x7c6   : > { %v1075_v38 = vpop.f32.mrb[20].mxu0 }
 0x7c7   : > { %v1592_v39 = vpop.f32.mrb[21].mxu0 }
 0x7c8   : > { %v1078_v40 = vpop.f32.mrb[22].mxu0 }
 0x7c9   : > { %v1082_v41 = vpack.c.bf16 %v1078_v40, %v1075_v38  ;;  %v1593_v42 = vpop.f32.mrb[23].mxu0 }
 0x7cb   : > { %1597 = vmatmul.mubr.msk.bf16.vlgmr.msra.gmra.mrb[20].mxu1 %vm609_vm2, %v1082_v41 }
 0x7cc   : > { %1608 = vmatprep.mubr.msk.bf16.mxu1 %vm1940_vm0, %v1939_v0 }
 0x7ce   : > { %v1178_v43 = vpop.f32.mrb[24].mxu0 }
 0x7cf   : > { %v1185_v44 = vmul.f32 0.35355338, %v1178_v43  ;;  %v1604_v45 = vpop.f32.mrb[25].mxu0 }
 0x7d0   : > { %v1181_v46 = vpop.f32.mrb[26].mxu0 }
 0x7d1   : > { %v1186_v47 = vmul.f32 0.35355338, %v1181_v46  ;;  %v1605_v48 = vpop.f32.mrb[27].mxu0  ;;  %v1187_v49 = vsel %vm607_vm3, %v1185_v44, -1e+30 }
 0x7d2   : > { %v1189_v50 = vsel %vm661_vm4, %v1187_v49, -inf }
 0x7d3   : > { %1190 = vmax.xlane.f32.xlu0 %v1189_v50  ;;  %v1188_v51 = vsel %vm608_vm5, %v1186_v47, -1e+30 }
 0x7d4   : > { %v1192_v52 = vsel %vm661_vm4, %v1188_v51, -inf }
 0x7d5   : > { %1193 = vmax.xlane.f32.xlu1 %v1192_v52 }
 0x7e6   : > { %1212 = vrot.lane.b32.xlu1 %v2297_v2, %s1943_s19  ;;  %v1479_v2 = vld [vmem:[%s2457_s7 + $0xc] sm:$0xf]  ;;  %s2402_s19 = scalar_lea.hbm %s2483_s18, %s1488_s9 }
 0x7e7   : > { %v1266_v61 = vsel %vm865_vm6, %v1479_v2, 0 }
 0x7e8   : > { %1613 = vmatpush3.bf16.msra.mxu0 %v1266_v61 }
 0x860   : > { %v1191_v0 = vpop.xlane.xlu0 %1190 }
 0x861   : > { %v1195_v53 = vsub.f32 %v1187_v49, %v1191_v0 }
 0x862   : > { %v1194_v54 = vpop.xlane.xlu1 %1193 }
 0x863   : > { %v1197_v55 = vmul.f32 1.442695, %v1195_v53  ;;  %v1196_v56 = vsub.f32 %v1188_v51, %v1194_v54 }
 0x865   : > { %1735 = vpow2.f32 %v1197_v55  ;;  %v1199_v29 = vmul.f32 1.442695, %v1196_v56 }
 0x866   : > { %v1213_v57 = vpop.permute.xlu1 %1212 }
 0x867   : > { %1737 = vpow2.f32 %v1199_v29  ;;  %1607 = vmatpush3.bf16.msra.mxu1 %v1213_v57 }
 0x86f   : > { %v1736_v58 = vpop.eup %1735 }
 0x870   : > { %v1201_v30 = vsel %vm661_vm4, %v1736_v58, 0.0 }
 0x871   : > { %v1738_v31 = vpop.eup %1737  ;;  %1202 = vadd.xlane.f32.xlu0 %v1201_v30 }
 0x872   : > { %v1204_v60 = vsel %vm661_vm4, %v1738_v31, 0.0 }
 0x875   : > { %1205 = vadd.xlane.f32.xlu0 %v1204_v60 }
 0x89e   : > { %v1125_v63 = vpop.f32.mrb[20].mxu1 }
 0x89f   : > { %v1132_v1 = vadd.f32 %v1125_v63, %v2337_v59  ;;  %v1598_v3 = vpop.f32.mrb[21].mxu1 }
 0x8a0   : > { %v1128_v4 = vpop.f32.mrb[22].mxu1 }
 0x8a1   : > { %v1133_v5 = vadd.f32 %v1128_v4, %v2339_v62  ;;  %v1599_v6 = vpop.f32.mrb[23].mxu1 }
 0x8fe   : > { %v1203_v7 = vpop.xlane.xlu0 %1202 }
 0x8ff   : > { %1739 = vrcp.f32 %v1203_v7 }
 0x902   : > { %v1206_v8 = vpop.xlane.xlu0 %1205 }
 0x903   : > { %1741 = vrcp.f32 %v1206_v8 }
 0x909   : > { %v1740_v9 = vpop.eup %1739 }
 0x90a   : > { %v1209_v11 = vmul.f32 %v1740_v9, %v1736_v58 }
 0x90d   : > { %v1742_v10 = vpop.eup %1741 }
 0x90e   : > { %v1210_v12 = vmul.f32 %v1742_v10, %v1738_v31 }
 0x910   : > { %v1211_v13 = vpack.c.bf16 %v1210_v12, %v1209_v11 }
 0x912   : > { %1609 = vmatmul.mubr.msk.bf16.vlgmr.msra.gmra.mrb[24].mxu1 %vm661_vm4, %v1211_v13 }
 0x9e5   : > { %v1252_v14 = vpop.f32.mrb[24].mxu1 }
 0x9e6   : > { %v1610_v59 = vpop.f32.mrb[25].mxu1 }
 0x9e7   : > { %v1255_v15 = vpop.f32.mrb[26].mxu1 }
 0x9e8   : > { %v1259_v16 = vpack.c.bf16 %v1255_v15, %v1252_v14  ;;  %v1611_v17 = vpop.f32.mrb[27].mxu1 }
 0x9ea   : > { %1615 = vmatmul.mubr.msk.bf16.vlgmr.msra.gmra.mrb[28].mxu0 %vm609_vm2, %v1259_v16 }
 0xabd   : > { %v1302_v62 = vpop.f32.mrb[28].mxu0 }
 0xabe   : > { %v1309_v20 = vadd.f32 %v1302_v62, %v1132_v1  ;;  %v1616_v22 = vpop.f32.mrb[29].mxu0 }
 0xabf   : > { %v1305_v23 = vpop.f32.mrb[30].mxu0 }
 0xac0   : > { %v1318_v24 = vadd.f32 %v1481_v19, %v1309_v20  ;;  %v1310_v25 = vadd.f32 %v1305_v23, %v1133_v5  ;;  %v1617_v26 = vpop.f32.mrb[31].mxu0 }
 0xac2   : > { %1320 = vst.msk [vmem:[%s394_s20] sm:$0xff] %vm426_vm1, %v1318_v24  ;;  %v1319_v27 = vadd.f32 %v1481_v19, %v1310_v25 }
 0xac4   : > { %1321 = vst.msk [vmem:[%s394_s20 + $0x8] sm:$0xff] %vm426_vm1, %v1319_v27 }
 0xac5   : > { %1870 = shalt.err (!%p1867_p4)
}
 0xac6   : > { %s1871_s26 = scalar_lea.hbm %s2402_s19, 256  ;;  %s1875_s9 = scalar_lea.hbm %s2483_s18, 512 }
 0xac7   : > { %p1872_p9 = scmp.ne.s32.totalorder %s2402_s19, %s1871_s26  ;;  %p1876_p11 = scmp.lt.u32.totalorder %s2402_s19, %s2483_s18 }
 0xac8   : > { %p1877_p13 = scmp.lt.u32.totalorder %s1875_s9, %s1871_s26  ;;  %p1879_p10 = scmp.lt.u32.totalorder %s1871_s26, %s2402_s19 }
 0xac9   : > { %p1873_p0 = pnand %p1872_p9, %p2151_p5 }
 0xaca   : > { %p1878_p6 = por %p1877_p13, %p1876_p11 }
 0xacb   : > { %p1874_p8 = pneg %p1873_p0 }
 0xacc   : > { %p1880_p3 = por %p1879_p10, %p1878_p6 }
 0xace   : > { %p1881_p7 = pnand %p1880_p3, %p1874_p8 }
 0xad0   : > { %1884 = shalt.err (!%p1881_p7)
}
 0xad1   : > { %s1945_s21 = smov 128   ;;  %s1946_s28 = smov 8  }
 0xad2   : > { %1632 = dma.vmem_to_hbm [thread:$0]  (%p2151_p5), %s2404_s29, 256, %s2402_s19, %s1323_s13, %s1945_s21, %s1945_s21, %s1946_s28  }
 0xad3 PF: > { %s2484_s15 = sld [smem:[#allocation15_spill]]  ;;  %s2485_s17 = sld [smem:[#allocation16_spill]] }
 0xad4   : > { %p2487_p1 = scmp.ge.s32.totalorder %s1931_s12, 2 }
 0xad9   : > { %s1351_s25 = sand.u32 1, %s2484_s15   ;;  %p2486_p12 = scmp.ne.s32.totalorder %s2485_s17, 0 }
 0xada   : > { %s1352_s26 = scalar_lea.sflag [#allocation4], %s1351_s25 }
 0xadb   : > { %p1649_p2 = pnand %p2487_p1, %p2486_p12 }
 0xadd   : > { %1914 = dma.done.wait (!%p1649_p2), %s1352_s26, 256  }
 0xade   : > { %1916 = vsyncadd (!%p1649_p2), %s1352_s26, 4294967040  ;;  %p24_p4 = scmp.ge.s32.totalorder %s2137_s14, 4   ;;  %s2488_s30 = smov %s1923_s10 }
 0xadf   : > { %s2489_s10 = smov %s1927_s11  ;;  %s2490_s11 = smov %s2147_s16 }
 0xae0   : > { %s2491_s12 = smov %s2137_s14  ;;  %26 = sbr.rel (!%p24_p4) target bundleno = 9 (0x9), region = 116 }
 0xae7   :  { %1357 = vsyncpa [#allocation3], 1 }
 0xae8   :  { %1359 = vsyncpa [#allocation3 + $0x1], 1 }
 0xae9   :  { %1360 = vsyncpa [#allocation6], 1 }
 0xaea   :  { %1361 = vsyncpa [#allocation9], 1 }
 0xaeb   :  { %1362 = vsyncpa [#allocation4], 1 }
 0xaec   :  { %1364 = vsyncpa [#allocation4 + $0x1], 1 }

</bundles_post_ra>
